<compile_context>
chip_gen: v5e
topology: v5e:2x2
jax: 0.10.0
libtpu: 0.0.40
codegen_flags: <defaults>
</compile_context>

<pallas_src>
import functools

import jax
import jax.numpy as jnp
from jax.experimental import pallas as pl
from jax.experimental.pallas import tpu as pltpu


def _round_up(x, m):
    return ((x + m - 1) // m) * m


# ---------------------------------------------------------------------------
# Fused kernel: conv(im2col matmul) + folded-BN bias + ReLU + MaxPool1d
# ---------------------------------------------------------------------------
def _encoder_kernel(a_ref, w_ref, b_ref, o_ref, *, pool):
    """One grid step = one (group, M-tile, N-tile).

    a_ref: (pool, tm, Kp)  bf16  im2col patches, pool-offset-major (shared across groups)
    w_ref: (1, Kp, tn)     bf16  BN-folded conv weights of this kernel-size group
    b_ref: (1, 1, tn)      f32   BN-folded bias
    o_ref: (1, tm, tn)     f32   pooled + ReLU'd conv output
    """
    w = w_ref[0]
    y = jnp.dot(a_ref[0], w, preferred_element_type=jnp.float32)
    for p in range(1, pool):
        y = jnp.maximum(y, jnp.dot(a_ref[p], w, preferred_element_type=jnp.float32))
    # max-pool then bias+ReLU == ReLU(maxpool(conv+bias)) (bias is per-channel,
    # ReLU is monotonic), matching Conv1d -> BN -> ReLU -> MaxPool1d.
    o_ref[0] = jnp.maximum(y + b_ref[0], 0.0).astype(o_ref.dtype)


def _encoder_pallas(patches, weights, bias, *, pool, tm, tn):
    P, Mp, Kp = patches.shape
    G, _, Np = weights.shape
    kernel = functools.partial(_encoder_kernel, pool=pool)
    return pl.pallas_call(
        kernel,
        out_shape=jax.ShapeDtypeStruct((G, Mp, Np), jnp.float32),
        grid_spec=pltpu.PrefetchScalarGridSpec(
            num_scalar_prefetch=0,
            grid=(G, Mp // tm, Np // tn),
            in_specs=[
                pl.BlockSpec((P, tm, Kp), lambda g, i, j: (0, i, 0)),
                pl.BlockSpec((1, Kp, tn), lambda g, i, j: (g, 0, j)),
                pl.BlockSpec((1, 1, tn), lambda g, i, j: (g, 0, j)),
            ],
            out_specs=pl.BlockSpec((1, tm, tn), lambda g, i, j: (g, i, j)),
        ),
        compiler_params=pltpu.CompilerParams(
            dimension_semantics=("parallel", "parallel", "parallel")),
    )(patches, weights, bias)


# ---------------------------------------------------------------------------
# Forward (jitted end-to-end; im2col / transposes are XLA glue in the same jit)
# ---------------------------------------------------------------------------
def encoder_forward(params, x, *, kernel_sizes, pool_size):
    """x: (B, L, 4) — identical to Encoder.forward's input (it transposes to NCL).
    Returns (B, len(kernel_sizes)*out_channels, L // pool_size)."""
    B, L, C = x.shape
    G = len(kernel_sizes)
    k_max = max(kernel_sizes)
    K = k_max * C
    Kp = _round_up(K, 16)
    O = params["w"][0].shape[0]
    Lp = L // pool_size
    eps = 1e-5

    # ---- im2col with the widest tap window, pool-offset-major ---------------
    left = (k_max - 1) // 2
    right = (k_max - 1) - left
    xp = jnp.pad(x, ((0, 0), (left, right), (0, 0)))
    idx = jnp.arange(Lp * pool_size)[:, None] + jnp.arange(k_max)[None, :]
    patches = xp[:, idx, :]                                    # (B, Lp*pool, k_max, C)
    patches = patches.reshape(B, Lp, pool_size, K)
    patches = jnp.transpose(patches, (2, 0, 1, 3)).reshape(pool_size, B * Lp, K)

    M = B * Lp
    tm = 128 if M >= 128 else _round_up(M, 16)
    Mp = _round_up(M, tm)
    if O % 128 == 0:
        Np = O
        tn = 256 if O % 256 == 0 else 128
    elif O < 128:
        Np, tn = O, O                                           # full-dim block
    else:
        Np, tn = _round_up(O, 128), 128

    patches = jnp.pad(patches, ((0, 0), (0, Mp - M), (0, Kp - K))).astype(jnp.bfloat16)

    # ---- fold BatchNorm (eval) into conv weights/bias; align 'same' centres --
    w_list, b_list = [], []
    for g, k in enumerate(kernel_sizes):
        w = params["w"][g]                                      # (O, C, k) PyTorch layout
        scale = params["g"][g] / jnp.sqrt(params["rv"][g] + eps)
        shift = params["bt"][g] - params["rm"][g] * scale
        off = (k_max - 1) // 2 - (k - 1) // 2                   # centre alignment
        w_pad = jnp.zeros((O, C, k_max), jnp.float32).at[:, :, off:off + k].set(w)
        wf = jnp.transpose(w_pad, (2, 1, 0)).reshape(K, O)      # (k, C) flatten order
        wf = wf * scale[None, :]
        bf = params["b"][g] * scale + shift
        w_list.append(jnp.pad(wf, ((0, Kp - K), (0, Np - O))))
        b_list.append(jnp.pad(bf, (0, Np - O)))
    W = jnp.stack(w_list).astype(jnp.bfloat16)                  # (G, Kp, Np)
    Bv = jnp.stack(b_list).reshape(G, 1, Np)                    # (G, 1, Np) f32

    out = _encoder_pallas(patches, W, Bv, pool=pool_size, tm=tm, tn=tn)
    out = out[:, :M, :O].reshape(G, B, Lp, O)
    out = jnp.transpose(out, (1, 0, 3, 2)).reshape(B, G * O, Lp)  # == torch.cat(dim=1)
    return out


# ---------------------------------------------------------------------------
# Pure-JAX f32 reference (independent path) for a correctness check
# ---------------------------------------------------------------------------
def encoder_reference(params, x, kernel_sizes, pool_size):
    B, L, C = x.shape
    eps = 1e-5
    outs = []
    for g, k in enumerate(kernel_sizes):
        left = (k - 1) // 2
        right = (k - 1) - left
        xp = jnp.pad(x, ((0, 0), (left, right), (0, 0)))
        idx = jnp.arange(L)[:, None] + jnp.arange(k)[None, :]
        patches = xp[:, idx, :]                                 # (B, L, k, C)
        y = jnp.einsum("blkc,ock->blo", patches, params["w"][g]) + params["b"][g]
        scale = params["g"][g] / jnp.sqrt(params["rv"][g] + eps)
        y = (y - params["rm"][g]) * scale + params["bt"][g]
        y = jnp.maximum(y, 0.0)
        Lp = L // pool_size
        y = y[:, :Lp * pool_size].reshape(B, Lp, pool_size, -1).max(axis=2)
        outs.append(jnp.transpose(y, (0, 2, 1)))                # (B, O, Lp)
    return jnp.concatenate(outs, axis=1)


# ---------------------------------------------------------------------------
# Deterministic parameter init (shapes match ConvBlock / Encoder __init__)
# ---------------------------------------------------------------------------
def init_params(key, kernel_sizes, out_channels, in_channels=4):
    keys = iter(jax.random.split(key, 8 * len(kernel_sizes)))

    def rnd(shape, scale=0.1):
        return scale * jax.random.normal(next(keys), shape, jnp.float32)

    p = {"w": [], "b": [], "g": [], "bt": [], "rm": [], "rv": []}
    for k in kernel_sizes:
        p["w"].append(rnd((out_channels, in_channels, k)))
        p["b"].append(rnd((out_channels,)))
        p["g"].append(1.0 + rnd((out_channels,)))
        p["bt"].append(rnd((out_channels,)))
        p["rm"].append(rnd((out_channels,)))
        p["rv"].append(1.0 + 0.1 * jnp.abs(
            jax.random.normal(next(keys), (out_channels,), jnp.float32)))
    return p


if __name__ == "__main__":
    kernel_sizes = (6, 9, 12, 15)
    out_channels = 128          # small variant of the module's out_channels arg
    pool_size = 3

    key = jax.random.PRNGKey(0)
    kp, kx = jax.random.split(key)
    params = init_params(kp, kernel_sizes, out_channels)

    B, L = 2, 48
    x = jax.random.normal(kx, (B, L, 4), jnp.float32)           # (B, L, 4)

    fwd = jax.jit(functools.partial(encoder_forward,
                                    kernel_sizes=kernel_sizes,
                                    pool_size=pool_size))
    out = jax.block_until_ready(fwd(params, x))

    assert out.shape == (B, len(kernel_sizes) * out_channels, L // pool_size)
    assert bool(jnp.all(jnp.isfinite(out)))

    ref = encoder_reference(params, x, kernel_sizes, pool_size)
    max_err = float(jnp.max(jnp.abs(out - ref)))
    assert max_err < 5e-2, f"max abs err {max_err}"             # bf16-matmul tolerance

    print("KERNEL_OK")
</pallas_src>

<mosaic_0001>
module attributes {stable_mosaic.version = 11 : i64} {
  func.func @_encoder_kernel(%arg0: i32, %arg1: i32, %arg2: i32, %arg3: memref<3x32x64xbf16, #tpu.memory_space<vmem>>, %arg4: memref<1x64x128xbf16, #tpu.memory_space<vmem>>, %arg5: memref<1x1x128xf32, #tpu.memory_space<vmem>>, %arg6: memref<1x32x128xf32, #tpu.memory_space<vmem>>) attributes {dimension_semantics = [#tpu.dimension_semantics<parallel>, #tpu.dimension_semantics<parallel>, #tpu.dimension_semantics<parallel>], iteration_bounds = array<i64: 4, 1, 1>, scalar_prefetch = 0 : i64, scratch_operands = 0 : i64, tpu.core_type = #tpu.core_type<tc>, window_params = [{transform_indices = @transform_0, window_bounds = array<i64: 3, 32, 64>}, {transform_indices = @transform_1, window_bounds = array<i64: 1, 64, 128>}, {transform_indices = @transform_2, window_bounds = array<i64: 1, 1, 128>}, {transform_indices = @transform_3, window_bounds = array<i64: 1, 32, 128>}]} {
    %c0 = arith.constant 0 : index
    %c0_0 = arith.constant 0 : index
    %c0_1 = arith.constant 0 : index
    %0 = vector.load %arg4[%c0, %c0_0, %c0_1] : memref<1x64x128xbf16, #tpu.memory_space<vmem>>, vector<1x64x128xbf16>
    %1 = vector.shape_cast %0 : vector<1x64x128xbf16> to vector<64x128xbf16>
    %c0_2 = arith.constant 0 : index
    %c0_3 = arith.constant 0 : index
    %c0_4 = arith.constant 0 : index
    %2 = vector.load %arg3[%c0_2, %c0_3, %c0_4] : memref<3x32x64xbf16, #tpu.memory_space<vmem>>, vector<1x32x64xbf16>
    %3 = vector.shape_cast %2 : vector<1x32x64xbf16> to vector<32x64xbf16>
    %cst = arith.constant dense<0.000000e+00> : vector<32x128xf32>
    %4 = tpu.matmul %3, %1, %cst {dimension_numbers = #tpu.dot_dimension_numbers<[1], [0], [0], [1], [0, 0, 1, 1], [], []>} : vector<32x64xbf16>, vector<64x128xbf16>, vector<32x128xf32> -> vector<32x128xf32>
    %c1 = arith.constant 1 : index
    %c0_5 = arith.constant 0 : index
    %c0_6 = arith.constant 0 : index
    %5 = vector.load %arg3[%c1, %c0_5, %c0_6] : memref<3x32x64xbf16, #tpu.memory_space<vmem>>, vector<1x32x64xbf16>
    %6 = vector.shape_cast %5 : vector<1x32x64xbf16> to vector<32x64xbf16>
    %cst_7 = arith.constant dense<0.000000e+00> : vector<32x128xf32>
    %7 = tpu.matmul %6, %1, %cst_7 {dimension_numbers = #tpu.dot_dimension_numbers<[1], [0], [0], [1], [0, 0, 1, 1], [], []>} : vector<32x64xbf16>, vector<64x128xbf16>, vector<32x128xf32> -> vector<32x128xf32>
    %8 = arith.maximumf %4, %7 : vector<32x128xf32>
    %c2 = arith.constant 2 : index
    %c0_8 = arith.constant 0 : index
    %c0_9 = arith.constant 0 : index
    %9 = vector.load %arg3[%c2, %c0_8, %c0_9] : memref<3x32x64xbf16, #tpu.memory_space<vmem>>, vector<1x32x64xbf16>
    %10 = vector.shape_cast %9 : vector<1x32x64xbf16> to vector<32x64xbf16>
    %cst_10 = arith.constant dense<0.000000e+00> : vector<32x128xf32>
    %11 = tpu.matmul %10, %1, %cst_10 {dimension_numbers = #tpu.dot_dimension_numbers<[1], [0], [0], [1], [0, 0, 1, 1], [], []>} : vector<32x64xbf16>, vector<64x128xbf16>, vector<32x128xf32> -> vector<32x128xf32>
    %12 = arith.maximumf %8, %11 : vector<32x128xf32>
    %c0_11 = arith.constant 0 : index
    %c0_12 = arith.constant 0 : index
    %c0_13 = arith.constant 0 : index
    %13 = vector.load %arg5[%c0_11, %c0_12, %c0_13] : memref<1x1x128xf32, #tpu.memory_space<vmem>>, vector<1x1x128xf32>
    %14 = vector.shape_cast %13 : vector<1x1x128xf32> to vector<1x128xf32>
    %15 = vector.broadcast %14 : vector<1x128xf32> to vector<32x128xf32>
    %16 = arith.addf %12, %15 : vector<32x128xf32>
    %cst_14 = arith.constant 0.000000e+00 : f32
    %17 = vector.broadcast %cst_14 : f32 to vector<32x128xf32>
    %18 = arith.maximumf %16, %17 : vector<32x128xf32>
    %c0_15 = arith.constant 0 : index
    %c0_16 = arith.constant 0 : index
    %c0_17 = arith.constant 0 : index
    %19 = vector.load %arg6[%c0_15, %c0_16, %c0_17] : memref<1x32x128xf32, #tpu.memory_space<vmem>>, vector<1x32x128xf32>
    %20 = vector.shape_cast %19 : vector<1x32x128xf32> to vector<32x128xf32>
    %21 = vector.shape_cast %18 : vector<32x128xf32> to vector<1x32x128xf32>
    tpu.vector_store %arg6[%c0_15, %c0_16, %c0_17], %21 {strides = array<i32>} : memref<1x32x128xf32, #tpu.memory_space<vmem>>, vector<1x32x128xf32>,
    return
  }
  func.func @transform_0(%arg0: i32, %arg1: i32, %arg2: i32) -> (i32, i32, i32) {
    %c0_i32 = arith.constant 0 : i32
    %c0_i32_0 = arith.constant 0 : i32
    %c0_i32_1 = arith.constant 0 : i32
    return %c0_i32, %arg1, %c0_i32_0 : i32, i32, i32
  }
  func.func @transform_1(%arg0: i32, %arg1: i32, %arg2: i32) -> (i32, i32, i32) {
    %c0_i32 = arith.constant 0 : i32
    %c0_i32_0 = arith.constant 0 : i32
    return %arg0, %c0_i32, %arg2 : i32, i32, i32
  }
  func.func @transform_2(%arg0: i32, %arg1: i32, %arg2: i32) -> (i32, i32, i32) {
    %c0_i32 = arith.constant 0 : i32
    %c0_i32_0 = arith.constant 0 : i32
    return %arg0, %c0_i32, %arg2 : i32, i32, i32
  }
  func.func @transform_3(%arg0: i32, %arg1: i32, %arg2: i32) -> (i32, i32, i32) {
    %c0_i32 = arith.constant 0 : i32
    return %arg0, %arg1, %arg2 : i32, i32, i32
  }
}

</mosaic_0001>

<bundles_post_ra>
// kernel: encoder_forward.1
= control target key start
LH: loop header
LB: loop body
LE: loop exit
PB: predicated region body
PF: predicated region fallthrough
CT: control target
= control target key end

     0   :  { %s722_s12 = smov 0   ;;  %s724_s13 = smov 0   ;;  %s784_s0 = inlined_call_operand.vmem [shape: bf16[3,32,64], index: 0, kind: input, shape index: {}]   ;;  %s785_s1 = inlined_call_operand.vmem [shape: bf16[4,64,128], index: 1, kind: input, shape index: {}]   ;;  %s786_s2 = inlined_call_operand.vmem [shape: f32[4,1,128], index: 2, kind: input, shape index: {}]   ;;  %s787_s3 = inlined_call_operand.vmem [shape: f32[4,32,128], index: 3, kind: output, shape index: {}]  }
   0x1   :  { %s726_s14 = smov 0  }
   0x2 LB: > { %s32_s15 = sadd.s32 1, %s696_s13  ;;  %p576_p0 = scmp.ge.s32.totalorder %s700_s14, 1  ;;  %s700_s14 = sphi %s726_s14, %s13_s14   ;;  %s696_s13 = sphi %s724_s13, %s789_s13   ;;  %s692_s12 = sphi %s722_s12, %s788_s12  }
   0x3   : > { %p34_p1 = scmp.ge.s32.totalorder %s32_s15, 4  ;;  %p189_p2 = scmp.lt.s32.totalorder %s700_s14, 5 }
   0x5   : > { %s791_s15 = smov (%p34_p1, %s32_s15), 0  ;;  %p190_p3 = pnand %p576_p0, %p189_p2 }
   0x6   : > { %p240_p4 = scmp.lt.s32.totalorder (!%p190_p3), %s692_s12, 3 }
   0x7   : > { %193 = sbr.rel (%p190_p3) target bundleno = 195 (0xc3), region = 32 }
   0xc   : > { %s793_s12 = smov (!%p240_p4, %s692_s12), 3  ;;  %v643_v4 = vld [vmem:[%s784_s0] sm:$0xff]  ;;  %v645_v5 = vld [vmem:[%s784_s0 + $0x10] sm:$0xff]  ;;  %vm314_vm0 = vcmask 523264   ;;  %v644_v7 = vld [vmem:[%s784_s0 + $0x8] sm:$0xff] }
   0xd   : > { %s637_s16 = sshll.u32 %s793_s12, 5  ;;  %v647_v6 = vld [vmem:[%s784_s0 + $0x20] sm:$0xff]  ;;  %s253_s30 = scalar_lea.vmem %s786_s2, %s793_s12  ;;  %v646_v8 = vld [vmem:[%s784_s0 + $0x18] sm:$0xff]  ;;  %v648_v9 = vld [vmem:[%s784_s0 + $0x28] sm:$0xff] }
   0xe   : > { %s247_s19 = scalar_lea.vmem %s785_s1, %s637_s16  ;;  %v677_v13 = vld [vmem:[%s253_s30] ss:$0 sm:$0xff]  ;;  %s265_s10 = scalar_lea.vmem %s787_s3, %s637_s16 }
   0xf   : > { %v642_v0 = vld [vmem:[%s247_s19 + $0x18] sm:$0xff]  ;;  %v641_v1 = vld [vmem:[%s247_s19 + $0x10] sm:$0xff]  ;;  %v640_v2 = vld [vmem:[%s247_s19 + $0x8] sm:$0xff] }
  0x10   : > { %325 = vmatpush.bf16.msra.mxu0 %v642_v0  ;;  %365 = vmatpush.bf16.msra.mxu1 %v642_v0  ;;  %v639_v3 = vld [vmem:[%s247_s19] sm:$0xff] }
  0x11   : > { %409 = vmatpush.bf16.msra.mxu2 %v642_v0  ;;  %649 = vmatpush.bf16.msra.mxu3 %v642_v0 }
  0x14   : > { %326 = vmatpush.bf16.msra.mxu0 %v641_v1  ;;  %366 = vmatpush.bf16.msra.mxu1 %v641_v1 }
  0x15   : > { %410 = vmatpush.bf16.msra.mxu2 %v641_v1  ;;  %650 = vmatpush.bf16.msra.mxu3 %v641_v1 }
  0x18   : > { %327 = vmatpush.bf16.msra.mxu0 %v640_v2  ;;  %367 = vmatpush.bf16.msra.mxu1 %v640_v2 }
  0x19   : > { %411 = vmatpush.bf16.msra.mxu2 %v640_v2  ;;  %651 = vmatpush.bf16.msra.mxu3 %v640_v2 }
  0x1c   : > { %328 = vmatpush.bf16.msra.mxu0 %v639_v3  ;;  %368 = vmatpush.bf16.msra.mxu1 %v639_v3 }
  0x1d   : > { %412 = vmatpush.bf16.msra.mxu2 %v639_v3  ;;  %652 = vmatpush.bf16.msra.mxu3 %v639_v3 }
  0x1f   : > { %605 = vmatmul.msk.bf16.vlgmr.msra.gmra.mxu0 %vm314_vm0, %v643_v4  ;;  %619 = vmatmul.msk.bf16.vlgmr.msra.gmra.mxu1 %vm314_vm0, %v645_v5 }
  0x20   : > { %633 = vmatmul.msk.bf16.vlgmr.msra.gmra.mxu2 %vm314_vm0, %v647_v6  ;;  %606 = vmatmul.msk.bf16.vlgmr.msra.gmra.mxu3 %vm314_vm0, %v644_v7 }
  0x2f   : > { %620 = vmatmul.msk.bf16.gmra.mxu1 %vm314_vm0, %v646_v8 }
  0x30   : > { %634 = vmatmul.msk.bf16.gmra.mxu2 %vm314_vm0, %v648_v9 }
  0x9c   : > { %v370_v10 = vpop.f32.mrf.mxu1  ;;  %v330_v11 = vpop.f32.mrf.mxu0 }
  0x9d   : > { %v380_v12 = vmax.f32 %v330_v11, %v370_v10 }
  0xa3   : > { %v414_v14 = vpop.f32.mrf.mxu2  ;;  %v335_v25 = vpop.f32.mrf.mxu3 }
  0xa4   : > { %v424_v15 = vmax.f32 %v380_v12, %v414_v14  ;;  %v372_v16 = vpop.f32.mrf.mxu1  ;;  %v332_v18 = vpop.f32.mrf.mxu0 }
  0xa5   : > { %v381_v20 = vmax.f32 %v332_v18, %v372_v16 }
  0xa6   : > { %v432_v17 = vadd.f32 %v677_v13, %v424_v15 }
  0xa8   : > { %v436_v19 = vmax.f32 %v432_v17, 0.0 }
  0xaa   : > { %440 = vst [vmem:[%s265_s10] sm:$0xff] %v436_v19 }
  0xab   : > { %v416_v21 = vpop.f32.mrf.mxu2  ;;  %v337_v33 = vpop.f32.mrf.mxu3 }
  0xac   : > { %v425_v22 = vmax.f32 %v381_v20, %v416_v21  ;;  %v375_v23 = vpop.f32.mrf.mxu1 }
  0xad   : > { %v382_v27 = vmax.f32 %v335_v25, %v375_v23 }
  0xae   : > { %v433_v24 = vadd.f32 %v677_v13, %v425_v22 }
  0xb0   : > { %v437_v26 = vmax.f32 %v433_v24, 0.0 }
  0xb2   : > { %441 = vst [vmem:[%s265_s10 + $0x8] sm:$0xff] %v437_v26 }
  0xb3   : > { %v419_v28 = vpop.f32.mrf.mxu2 }
  0xb4   : > { %v426_v29 = vmax.f32 %v382_v27, %v419_v28  ;;  %v377_v31 = vpop.f32.mrf.mxu1 }
  0xb5   : > { %v383_v34 = vmax.f32 %v337_v33, %v377_v31 }
  0xb6   : > { %v434_v30 = vadd.f32 %v677_v13, %v426_v29 }
  0xb8   : > { %v438_v32 = vmax.f32 %v434_v30, 0.0 }
  0xba   : > { %442 = vst [vmem:[%s265_s10 + $0x10] sm:$0xff] %v438_v32 }
  0xbb   : > { %v421_v35 = vpop.f32.mrf.mxu2 }
  0xbc   : > { %v427_v36 = vmax.f32 %v383_v34, %v421_v35 }
  0xbe   : > { %v435_v37 = vadd.f32 %v677_v13, %v427_v36 }
  0xc0   : > { %v439_v38 = vmax.f32 %v435_v37, 0.0 }
  0xc2   : > { %443 = vst [vmem:[%s265_s10 + $0x18] sm:$0xff] %v439_v38 }
  0xc3 PF: > { %s13_s14 = sadd.s32 1, %s700_s14   ;;  %s788_s12 = smov %s696_s13 }
  0xc4   : > { %p10_p5 = scmp.ge.s32.totalorder %s13_s14, 6   ;;  %s789_s13 = smov %s791_s15 }
  0xc6   :  { %12 = sbr.rel (!%p10_p5) target bundleno = 2 (0x2), region = 70 }

</bundles_post_ra>
